<compile_context>
chip_gen: v5e
topology: v5e:2x2
jax: 0.10.0
libtpu: 0.0.40
codegen_flags: <defaults>
</compile_context>

<pallas_src>
import functools

import jax
import jax.numpy as jnp
from jax import lax
from jax.experimental import pallas as pl
from jax.experimental.pallas import tpu as pltpu


def _attention_kernel(x_ref, wqkv_ref, wout_ref, bout_ref, o_ref, slab_ref,
                      *, heads, dim_head):
    # x_ref   : (1, N, dim)       bf16  current batch element (pre-cast in wrapper)
    # wqkv_ref: (dim, 3*inner)    bf16  pre-transposed qkv weight, scale folded into Q cols
    # wout_ref: (inner, dim)      bf16  pre-transposed output-projection weight
    # bout_ref: (1, dim)          f32
    # o_ref   : (1, N, dim)       f32
    # slab_ref: (N, inner)        f32   VMEM scratch: per-head attn@V results
    inner = heads * dim_head

    x = x_ref[0]                                                  # (N, dim) bf16

    # Fused qkv projection: one wide MXU matmul, full dim-deep contraction,
    # f32 accumulation.  Scale is already folded into the Q columns.
    qkv = jnp.dot(x, wqkv_ref[...],
                  preferred_element_type=jnp.float32)             # (N, 3*inner)

    for h in range(heads):                                        # static unroll
        lo = h * dim_head
        hi = lo + dim_head
        qh = qkv[:, lo:hi].astype(jnp.bfloat16)                   # (N, d)
        kh = qkv[:, inner + lo:inner + hi].astype(jnp.bfloat16)   # (N, d)
        vh = qkv[:, 2 * inner + lo:2 * inner + hi].astype(jnp.bfloat16)

        # Scores: contract last dims directly — no transposed-K materialization.
        s = lax.dot_general(qh, kh, (((1,), (1,)), ((), ())),
                            preferred_element_type=jnp.float32)   # (N, N)
        s = s - jnp.max(s, axis=-1, keepdims=True)
        p = jnp.exp(s)                                            # EUP
        inv_l = pl.reciprocal(jnp.sum(p, axis=-1, keepdims=True),
                              approx=True)                        # (N, 1)

        # attn @ V with softmax normalization folded into the small (N, d) tile,
        # written into this head's lane range of the merged slab.
        slab_ref[:, lo:hi] = jnp.dot(p.astype(jnp.bfloat16), vh,
                                     preferred_element_type=jnp.float32) * inv_l

    # Single merged output projection: inner-deep contraction feeds the MXU
    # instead of `heads` separate d-deep matmuls.
    y = jnp.dot(slab_ref[...].astype(jnp.bfloat16), wout_ref[...],
                preferred_element_type=jnp.float32)               # (N, dim)
    o_ref[0] = (y + bout_ref[...]).astype(o_ref.dtype)


def attention_forward(x, w_qkv, w_out, b_out, *, heads, dim_head):
    """x: (B, N, dim) float32 -> (B, N, dim) float32.

    Weights follow the PyTorch nn.Linear convention:
      w_qkv: (3*inner, dim)   qkv = x @ w_qkv.T
      w_out: (dim, inner)     y   = out @ w_out.T + b_out
    """
    B, N, dim = x.shape
    inner = heads * dim_head
    scale = dim_head ** (-0.5)
    assert w_qkv.shape == (3 * inner, dim)
    assert w_out.shape == (dim, inner)

    # One-time (HBM, wrapper-side) prep:
    #  * pre-transpose weights so the kernel never transposes a tile,
    #  * fold 1/sqrt(d) into the Q columns of the qkv weight,
    #  * cast weights and activations to bf16 for the MXU / to halve x's DMA.
    w_qkv_t = w_qkv.T.astype(jnp.float32)                          # (dim, 3*inner)
    w_qkv_t = w_qkv_t.at[:, :inner].multiply(scale)                # fold scale into Q
    w_qkv_t = w_qkv_t.astype(jnp.bfloat16)
    w_out_t = jnp.asarray(w_out.T, dtype=jnp.bfloat16)             # (inner, dim)
    b_out2d = b_out.reshape(1, dim).astype(jnp.float32)
    x_bf16 = x.astype(jnp.bfloat16)

    kernel = functools.partial(_attention_kernel, heads=heads, dim_head=dim_head)

    return pl.pallas_call(
        kernel,
        out_shape=jax.ShapeDtypeStruct((B, N, dim), jnp.float32),
        grid_spec=pltpu.PrefetchScalarGridSpec(
            num_scalar_prefetch=0,
            grid=(B,),                                             # >=2 parallel slices feed both v7x TCs
            in_specs=[
                pl.BlockSpec((1, N, dim), lambda b: (b, 0, 0)),
                # Constant index_maps: weight tiles stay VMEM-resident.
                pl.BlockSpec((dim, 3 * inner), lambda b: (0, 0)),
                pl.BlockSpec((inner, dim), lambda b: (0, 0)),
                pl.BlockSpec((1, dim), lambda b: (0, 0)),
            ],
            out_specs=pl.BlockSpec((1, N, dim), lambda b: (b, 0, 0)),
            scratch_shapes=[pltpu.VMEM((N, inner), jnp.float32)],
        ),
        compiler_params=pltpu.CompilerParams(
            dimension_semantics=("parallel",)),
    )(x_bf16, w_qkv_t, w_out_t, b_out2d)


def attention_reference(x, w_qkv, w_out, b_out, *, heads, dim_head):
    """Pure-JAX (f32) reference mirroring the PyTorch forward."""
    B, N, dim = x.shape
    inner = heads * dim_head
    scale = dim_head ** (-0.5)
    qkv = x @ w_qkv.T                                              # (B, N, 3*inner)
    q, k, v = jnp.split(qkv, 3, axis=-1)

    def split_heads(t):                                            # 'b n (h d) -> b h n d'
        return t.reshape(B, N, heads, dim_head).transpose(0, 2, 1, 3)

    q, k, v = map(split_heads, (q, k, v))
    dots = jnp.einsum('bhnd,bhmd->bhnm', q, k) * scale
    attn = jax.nn.softmax(dots, axis=-1)
    out = jnp.einsum('bhnm,bhmd->bhnd', attn, v)
    out = out.transpose(0, 2, 1, 3).reshape(B, N, inner)           # 'b h n d -> b n (h d)'
    return out @ w_out.T + b_out


if __name__ == "__main__":
    # Small, module-consistent shapes.
    B, N, dim = 2, 8, 32
    heads, dim_head = 4, 8
    inner = heads * dim_head

    key = jax.random.PRNGKey(0)
    kx, kqkv, kwo, kbo = jax.random.split(key, 4)

    x = jax.random.normal(kx, (B, N, dim), dtype=jnp.float32)

    # Deterministic parameter init (PyTorch-Linear-style uniform bounds).
    bound_qkv = 1.0 / (dim ** 0.5)
    w_qkv = jax.random.uniform(kqkv, (3 * inner, dim), jnp.float32,
                               -bound_qkv, bound_qkv)
    bound_out = 1.0 / (inner ** 0.5)
    w_out = jax.random.uniform(kwo, (dim, inner), jnp.float32,
                               -bound_out, bound_out)
    b_out = jax.random.uniform(kbo, (dim,), jnp.float32,
                               -bound_out, bound_out)

    y = attention_forward(x, w_qkv, w_out, b_out,
                          heads=heads, dim_head=dim_head)
    y = jax.block_until_ready(y)

    y_ref = attention_reference(x, w_qkv, w_out, b_out,
                                heads=heads, dim_head=dim_head)
    assert y.shape == (B, N, dim)
    # bf16 MXU inputs/activations (f32 accumulation) + approx reciprocal.
    assert jnp.allclose(y, y_ref, atol=2e-2, rtol=2e-2), "mismatch vs reference"

    print("KERNEL_OK")
</pallas_src>

<mosaic_0001>
module attributes {stable_mosaic.version = 11 : i64} {
  func.func @_attention_kernel(%arg0: i32, %arg1: memref<1x8x32xbf16, #tpu.memory_space<vmem>>, %arg2: memref<32x96xbf16, #tpu.memory_space<vmem>>, %arg3: memref<32x32xbf16, #tpu.memory_space<vmem>>, %arg4: memref<1x32xf32, #tpu.memory_space<vmem>>, %arg5: memref<1x8x32xf32, #tpu.memory_space<vmem>>, %arg6: memref<8x32xf32, #tpu.memory_space<vmem>>) attributes {dimension_semantics = [#tpu.dimension_semantics<parallel>], iteration_bounds = array<i64: 2>, scalar_prefetch = 0 : i64, scratch_operands = 1 : i64, tpu.core_type = #tpu.core_type<tc>, window_params = [{transform_indices = @transform_0, window_bounds = array<i64: 1, 8, 32>}, {pipeline_mode = #tpu.pipeline_mode<synchronous>, transform_indices = @transform_1, window_bounds = array<i64: 32, 96>}, {pipeline_mode = #tpu.pipeline_mode<synchronous>, transform_indices = @transform_2, window_bounds = array<i64: 32, 32>}, {pipeline_mode = #tpu.pipeline_mode<synchronous>, transform_indices = @transform_3, window_bounds = array<i64: 1, 32>}, {transform_indices = @transform_4, window_bounds = array<i64: 1, 8, 32>}]} {
    %c0 = arith.constant 0 : index
    %c0_0 = arith.constant 0 : index
    %c0_1 = arith.constant 0 : index
    %0 = vector.load %arg1[%c0, %c0_0, %c0_1] : memref<1x8x32xbf16, #tpu.memory_space<vmem>>, vector<1x8x32xbf16>
    %1 = vector.shape_cast %0 : vector<1x8x32xbf16> to vector<8x32xbf16>
    %c0_2 = arith.constant 0 : index
    %c0_3 = arith.constant 0 : index
    %2 = vector.load %arg2[%c0_2, %c0_3] : memref<32x96xbf16, #tpu.memory_space<vmem>>, vector<32x96xbf16>
    %cst = arith.constant dense<0.000000e+00> : vector<8x96xf32>
    %3 = tpu.matmul %1, %2, %cst {dimension_numbers = #tpu.dot_dimension_numbers<[1], [0], [0], [1], [0, 0, 1, 1], [], []>} : vector<8x32xbf16>, vector<32x96xbf16>, vector<8x96xf32> -> vector<8x96xf32>
    %4 = vector.extract_strided_slice %3 {offsets = [0, 0], sizes = [8, 8], strides = [1, 1]} : vector<8x96xf32> to vector<8x8xf32>
    %5 = arith.truncf %4 : vector<8x8xf32> to vector<8x8xbf16>
    %6 = vector.extract_strided_slice %3 {offsets = [0, 32], sizes = [8, 8], strides = [1, 1]} : vector<8x96xf32> to vector<8x8xf32>
    %7 = arith.truncf %6 : vector<8x8xf32> to vector<8x8xbf16>
    %8 = vector.extract_strided_slice %3 {offsets = [0, 64], sizes = [8, 8], strides = [1, 1]} : vector<8x96xf32> to vector<8x8xf32>
    %9 = arith.truncf %8 : vector<8x8xf32> to vector<8x8xbf16>
    %cst_4 = arith.constant dense<0.000000e+00> : vector<8x8xf32>
    %10 = tpu.matmul %5, %7, %cst_4 {dimension_numbers = #tpu.dot_dimension_numbers<[1], [1], [0], [0], [0, 0, 1, 0], [], []>} : vector<8x8xbf16>, vector<8x8xbf16>, vector<8x8xf32> -> vector<8x8xf32>
    %cst_5 = arith.constant dense<0xFF800000> : vector<8xf32>
    %11 = vector.multi_reduction <maximumf>, %10, %cst_5 [1] : vector<8x8xf32> to vector<8xf32>
    %12 = vector.shape_cast %11 : vector<8xf32> to vector<8x1xf32>
    %13 = vector.broadcast %12 : vector<8x1xf32> to vector<8x8xf32>
    %14 = arith.subf %10, %13 : vector<8x8xf32>
    %15 = math.exp %14 : vector<8x8xf32>
    %cst_6 = arith.constant dense<0.000000e+00> : vector<8xf32>
    %16 = vector.multi_reduction <add>, %15, %cst_6 [1] : vector<8x8xf32> to vector<8xf32>
    %17 = vector.shape_cast %16 : vector<8xf32> to vector<8x1xf32>
    %18 = tpu.reciprocal %17 {approx = true} : vector<8x1xf32> -> vector<8x1xf32>
    %19 = arith.truncf %15 : vector<8x8xf32> to vector<8x8xbf16>
    %cst_7 = arith.constant dense<0.000000e+00> : vector<8x8xf32>
    %20 = tpu.matmul %19, %9, %cst_7 {dimension_numbers = #tpu.dot_dimension_numbers<[1], [0], [0], [1], [0, 0, 1, 1], [], []>} : vector<8x8xbf16>, vector<8x8xbf16>, vector<8x8xf32> -> vector<8x8xf32>
    %21 = vector.broadcast %18 : vector<8x1xf32> to vector<8x8xf32>
    %22 = arith.mulf %20, %21 : vector<8x8xf32>
    %c0_8 = arith.constant 0 : index
    %c0_9 = arith.constant 0 : index
    %23 = vector.load %arg6[%c0_8, %c0_9] : memref<8x32xf32, #tpu.memory_space<vmem>>, vector<8x8xf32>
    tpu.vector_store %arg6[%c0_8, %c0_9], %22 {strides = array<i32>} : memref<8x32xf32, #tpu.memory_space<vmem>>, vector<8x8xf32>,
    %24 = vector.extract_strided_slice %3 {offsets = [0, 8], sizes = [8, 8], strides = [1, 1]} : vector<8x96xf32> to vector<8x8xf32>
    %25 = arith.truncf %24 : vector<8x8xf32> to vector<8x8xbf16>
    %26 = vector.extract_strided_slice %3 {offsets = [0, 40], sizes = [8, 8], strides = [1, 1]} : vector<8x96xf32> to vector<8x8xf32>
    %27 = arith.truncf %26 : vector<8x8xf32> to vector<8x8xbf16>
    %28 = vector.extract_strided_slice %3 {offsets = [0, 72], sizes = [8, 8], strides = [1, 1]} : vector<8x96xf32> to vector<8x8xf32>
    %29 = arith.truncf %28 : vector<8x8xf32> to vector<8x8xbf16>
    %cst_10 = arith.constant dense<0.000000e+00> : vector<8x8xf32>
    %30 = tpu.matmul %25, %27, %cst_10 {dimension_numbers = #tpu.dot_dimension_numbers<[1], [1], [0], [0], [0, 0, 1, 0], [], []>} : vector<8x8xbf16>, vector<8x8xbf16>, vector<8x8xf32> -> vector<8x8xf32>
    %cst_11 = arith.constant dense<0xFF800000> : vector<8xf32>
    %31 = vector.multi_reduction <maximumf>, %30, %cst_11 [1] : vector<8x8xf32> to vector<8xf32>
    %32 = vector.shape_cast %31 : vector<8xf32> to vector<8x1xf32>
    %33 = vector.broadcast %32 : vector<8x1xf32> to vector<8x8xf32>
    %34 = arith.subf %30, %33 : vector<8x8xf32>
    %35 = math.exp %34 : vector<8x8xf32>
    %cst_12 = arith.constant dense<0.000000e+00> : vector<8xf32>
    %36 = vector.multi_reduction <add>, %35, %cst_12 [1] : vector<8x8xf32> to vector<8xf32>
    %37 = vector.shape_cast %36 : vector<8xf32> to vector<8x1xf32>
    %38 = tpu.reciprocal %37 {approx = true} : vector<8x1xf32> -> vector<8x1xf32>
    %39 = arith.truncf %35 : vector<8x8xf32> to vector<8x8xbf16>
    %cst_13 = arith.constant dense<0.000000e+00> : vector<8x8xf32>
    %40 = tpu.matmul %39, %29, %cst_13 {dimension_numbers = #tpu.dot_dimension_numbers<[1], [0], [0], [1], [0, 0, 1, 1], [], []>} : vector<8x8xbf16>, vector<8x8xbf16>, vector<8x8xf32> -> vector<8x8xf32>
    %41 = vector.broadcast %38 : vector<8x1xf32> to vector<8x8xf32>
    %42 = arith.mulf %40, %41 : vector<8x8xf32>
    %c0_14 = arith.constant 0 : index
    %c8 = arith.constant 8 : index
    %43 = vector.load %arg6[%c0_14, %c8] : memref<8x32xf32, #tpu.memory_space<vmem>>, vector<8x8xf32>
    tpu.vector_store %arg6[%c0_14, %c8], %42 {strides = array<i32>} : memref<8x32xf32, #tpu.memory_space<vmem>>, vector<8x8xf32>,
    %44 = vector.extract_strided_slice %3 {offsets = [0, 16], sizes = [8, 8], strides = [1, 1]} : vector<8x96xf32> to vector<8x8xf32>
    %45 = arith.truncf %44 : vector<8x8xf32> to vector<8x8xbf16>
    %46 = vector.extract_strided_slice %3 {offsets = [0, 48], sizes = [8, 8], strides = [1, 1]} : vector<8x96xf32> to vector<8x8xf32>
    %47 = arith.truncf %46 : vector<8x8xf32> to vector<8x8xbf16>
    %48 = vector.extract_strided_slice %3 {offsets = [0, 80], sizes = [8, 8], strides = [1, 1]} : vector<8x96xf32> to vector<8x8xf32>
    %49 = arith.truncf %48 : vector<8x8xf32> to vector<8x8xbf16>
    %cst_15 = arith.constant dense<0.000000e+00> : vector<8x8xf32>
    %50 = tpu.matmul %45, %47, %cst_15 {dimension_numbers = #tpu.dot_dimension_numbers<[1], [1], [0], [0], [0, 0, 1, 0], [], []>} : vector<8x8xbf16>, vector<8x8xbf16>, vector<8x8xf32> -> vector<8x8xf32>
    %cst_16 = arith.constant dense<0xFF800000> : vector<8xf32>
    %51 = vector.multi_reduction <maximumf>, %50, %cst_16 [1] : vector<8x8xf32> to vector<8xf32>
    %52 = vector.shape_cast %51 : vector<8xf32> to vector<8x1xf32>
    %53 = vector.broadcast %52 : vector<8x1xf32> to vector<8x8xf32>
    %54 = arith.subf %50, %53 : vector<8x8xf32>
    %55 = math.exp %54 : vector<8x8xf32>
    %cst_17 = arith.constant dense<0.000000e+00> : vector<8xf32>
    %56 = vector.multi_reduction <add>, %55, %cst_17 [1] : vector<8x8xf32> to vector<8xf32>
    %57 = vector.shape_cast %56 : vector<8xf32> to vector<8x1xf32>
    %58 = tpu.reciprocal %57 {approx = true} : vector<8x1xf32> -> vector<8x1xf32>
    %59 = arith.truncf %55 : vector<8x8xf32> to vector<8x8xbf16>
    %cst_18 = arith.constant dense<0.000000e+00> : vector<8x8xf32>
    %60 = tpu.matmul %59, %49, %cst_18 {dimension_numbers = #tpu.dot_dimension_numbers<[1], [0], [0], [1], [0, 0, 1, 1], [], []>} : vector<8x8xbf16>, vector<8x8xbf16>, vector<8x8xf32> -> vector<8x8xf32>
    %61 = vector.broadcast %58 : vector<8x1xf32> to vector<8x8xf32>
    %62 = arith.mulf %60, %61 : vector<8x8xf32>
    %c0_19 = arith.constant 0 : index
    %c16 = arith.constant 16 : index
    %63 = vector.load %arg6[%c0_19, %c16] : memref<8x32xf32, #tpu.memory_space<vmem>>, vector<8x8xf32>
    tpu.vector_store %arg6[%c0_19, %c16], %62 {strides = array<i32>} : memref<8x32xf32, #tpu.memory_space<vmem>>, vector<8x8xf32>,
    %64 = vector.extract_strided_slice %3 {offsets = [0, 24], sizes = [8, 8], strides = [1, 1]} : vector<8x96xf32> to vector<8x8xf32>
    %65 = arith.truncf %64 : vector<8x8xf32> to vector<8x8xbf16>
    %66 = vector.extract_strided_slice %3 {offsets = [0, 56], sizes = [8, 8], strides = [1, 1]} : vector<8x96xf32> to vector<8x8xf32>
    %67 = arith.truncf %66 : vector<8x8xf32> to vector<8x8xbf16>
    %68 = vector.extract_strided_slice %3 {offsets = [0, 88], sizes = [8, 8], strides = [1, 1]} : vector<8x96xf32> to vector<8x8xf32>
    %69 = arith.truncf %68 : vector<8x8xf32> to vector<8x8xbf16>
    %cst_20 = arith.constant dense<0.000000e+00> : vector<8x8xf32>
    %70 = tpu.matmul %65, %67, %cst_20 {dimension_numbers = #tpu.dot_dimension_numbers<[1], [1], [0], [0], [0, 0, 1, 0], [], []>} : vector<8x8xbf16>, vector<8x8xbf16>, vector<8x8xf32> -> vector<8x8xf32>
    %cst_21 = arith.constant dense<0xFF800000> : vector<8xf32>
    %71 = vector.multi_reduction <maximumf>, %70, %cst_21 [1] : vector<8x8xf32> to vector<8xf32>
    %72 = vector.shape_cast %71 : vector<8xf32> to vector<8x1xf32>
    %73 = vector.broadcast %72 : vector<8x1xf32> to vector<8x8xf32>
    %74 = arith.subf %70, %73 : vector<8x8xf32>
    %75 = math.exp %74 : vector<8x8xf32>
    %cst_22 = arith.constant dense<0.000000e+00> : vector<8xf32>
    %76 = vector.multi_reduction <add>, %75, %cst_22 [1] : vector<8x8xf32> to vector<8xf32>
    %77 = vector.shape_cast %76 : vector<8xf32> to vector<8x1xf32>
    %78 = tpu.reciprocal %77 {approx = true} : vector<8x1xf32> -> vector<8x1xf32>
    %79 = arith.truncf %75 : vector<8x8xf32> to vector<8x8xbf16>
    %cst_23 = arith.constant dense<0.000000e+00> : vector<8x8xf32>
    %80 = tpu.matmul %79, %69, %cst_23 {dimension_numbers = #tpu.dot_dimension_numbers<[1], [0], [0], [1], [0, 0, 1, 1], [], []>} : vector<8x8xbf16>, vector<8x8xbf16>, vector<8x8xf32> -> vector<8x8xf32>
    %81 = vector.broadcast %78 : vector<8x1xf32> to vector<8x8xf32>
    %82 = arith.mulf %80, %81 : vector<8x8xf32>
    %c0_24 = arith.constant 0 : index
    %c24 = arith.constant 24 : index
    %83 = vector.load %arg6[%c0_24, %c24] : memref<8x32xf32, #tpu.memory_space<vmem>>, vector<8x8xf32>
    tpu.vector_store %arg6[%c0_24, %c24], %82 {strides = array<i32>} : memref<8x32xf32, #tpu.memory_space<vmem>>, vector<8x8xf32>,
    %c0_25 = arith.constant 0 : index
    %c0_26 = arith.constant 0 : index
    %84 = vector.load %arg6[%c0_25, %c0_26] : memref<8x32xf32, #tpu.memory_space<vmem>>, vector<8x32xf32>
    %85 = arith.truncf %84 : vector<8x32xf32> to vector<8x32xbf16>
    %c0_27 = arith.constant 0 : index
    %c0_28 = arith.constant 0 : index
    %86 = vector.load %arg3[%c0_27, %c0_28] : memref<32x32xbf16, #tpu.memory_space<vmem>>, vector<32x32xbf16>
    %cst_29 = arith.constant dense<0.000000e+00> : vector<8x32xf32>
    %87 = tpu.matmul %85, %86, %cst_29 {dimension_numbers = #tpu.dot_dimension_numbers<[1], [0], [0], [1], [0, 0, 1, 1], [], []>} : vector<8x32xbf16>, vector<32x32xbf16>, vector<8x32xf32> -> vector<8x32xf32>
    %c0_30 = arith.constant 0 : index
    %c0_31 = arith.constant 0 : index
    %88 = vector.load %arg4[%c0_30, %c0_31] : memref<1x32xf32, #tpu.memory_space<vmem>>, vector<1x32xf32>
    %89 = vector.broadcast %88 : vector<1x32xf32> to vector<8x32xf32>
    %90 = arith.addf %87, %89 : vector<8x32xf32>
    %c0_32 = arith.constant 0 : index
    %c0_33 = arith.constant 0 : index
    %c0_34 = arith.constant 0 : index
    %91 = vector.load %arg5[%c0_32, %c0_33, %c0_34] : memref<1x8x32xf32, #tpu.memory_space<vmem>>, vector<1x8x32xf32>
    %92 = vector.shape_cast %91 : vector<1x8x32xf32> to vector<8x32xf32>
    %93 = vector.shape_cast %90 : vector<8x32xf32> to vector<1x8x32xf32>
    tpu.vector_store %arg5[%c0_32, %c0_33, %c0_34], %93 {strides = array<i32>} : memref<1x8x32xf32, #tpu.memory_space<vmem>>, vector<1x8x32xf32>,
    return
  }
  func.func @transform_0(%arg0: i32) -> (i32, i32, i32) {
    %c0_i32 = arith.constant 0 : i32
    %c0_i32_0 = arith.constant 0 : i32
    %c0_i32_1 = arith.constant 0 : i32
    return %arg0, %c0_i32, %c0_i32_0 : i32, i32, i32
  }
  func.func @transform_1(%arg0: i32) -> (i32, i32) {
    %c0_i32 = arith.constant 0 : i32
    %c0_i32_0 = arith.constant 0 : i32
    %c0_i32_1 = arith.constant 0 : i32
    return %c0_i32, %c0_i32_0 : i32, i32
  }
  func.func @transform_2(%arg0: i32) -> (i32, i32) {
    %c0_i32 = arith.constant 0 : i32
    %c0_i32_0 = arith.constant 0 : i32
    %c0_i32_1 = arith.constant 0 : i32
    return %c0_i32, %c0_i32_0 : i32, i32
  }
  func.func @transform_3(%arg0: i32) -> (i32, i32) {
    %c0_i32 = arith.constant 0 : i32
    %c0_i32_0 = arith.constant 0 : i32
    %c0_i32_1 = arith.constant 0 : i32
    return %c0_i32, %c0_i32_0 : i32, i32
  }
  func.func @transform_4(%arg0: i32) -> (i32, i32, i32) {
    %c0_i32 = arith.constant 0 : i32
    %c0_i32_0 = arith.constant 0 : i32
    %c0_i32_1 = arith.constant 0 : i32
    return %arg0, %c0_i32, %c0_i32_0 : i32, i32, i32
  }
}

</mosaic_0001>

<bundles_post_ra>
// kernel: tpu_custom_call.1
= control target key start
LH: loop header
LB: loop body
LE: loop exit
PB: predicated region body
PF: predicated region fallthrough
CT: control target
= control target key end

     0   :  { %9 = vsyncpa [#allocation4], 0  ;;  %s1214_s0 = inlined_call_operand.hbm [shape: bf16[2,8,32], index: 0, kind: input, shape index: {}]   ;;  %s1215_s1 = inlined_call_operand.hbm [shape: bf16[32,96], index: 1, kind: input, shape index: {}]   ;;  %s1216_s2 = inlined_call_operand.hbm [shape: bf16[32,32], index: 2, kind: input, shape index: {}]   ;;  %s1217_s3 = inlined_call_operand.vmem [shape: f32[1,32], index: 3, kind: input, shape index: {}]   ;;  %s1218_s4 = inlined_call_operand.hbm [shape: f32[2,8,32], index: 4, kind: output, shape index: {}]  }
   0x1   :  { %11 = vsyncpa [#allocation4 + $0x1], 0 }
   0x2   :  { %12 = vsyncpa [#allocation7], 0 }
   0x3   :  { %13 = vsyncpa [#allocation5], 0 }
   0x4   :  { %15 = vsyncpa [#allocation5 + $0x1], 0  ;;  %s1023_s15 = smov 0   ;;  %s1025_s16 = smov 0  }
   0x5   :  { %s1027_s17 = smov 0   ;;  %s1029_s18 = smov 0  }
   0x6 LB: > { %s152_s21 = sshll.u32 %s1215_s1, 4  ;;  %s1047_s22 = sadd.s32 4294967295, %s978_s18   ;;  %s978_s18 = sphi %s1029_s18, %s1229_s18   ;;  %s974_s17 = sphi %s1027_s17, %s1228_s17   ;;  %s970_s16 = sphi %s1025_s16, %s1227_s16   ;;  %s966_s15 = sphi %s1023_s15, %s1226_s15   ;;  %s153_s21 = int_to_ptr.hbm [resolvable:$true] %s152_s21 }
   0x7   : > { %p673_p0 = scmp.ge.s32.totalorder %s978_s18, 1  ;;  %p42_p1 = scmp.eq.s32.totalorder %s1047_s22, 0 }
   0x8   : > { %p141_p2 = scmp.lt.s32.totalorder %s978_s18, 3  ;;  %s980_s24 = smov [#allocation6]  }
   0x9   : > { %s154_s25 = sshll.u32 %s980_s24, 4  ;;  %s166_s28 = sshll.u32 %s1216_s2, 4  ;;  %s155_s25 = int_to_ptr.vmem [resolvable:$true] %s154_s25  ;;  %s167_s28 = int_to_ptr.hbm [resolvable:$true] %s166_s28 }
   0xa   : > { %p1052_p3 = pnand %p673_p0, %p141_p2  ;;  %s981_s29 = smov [#allocation8]  }
   0xb   : > { %s168_s30 = sshll.u32 %s981_s29, 4  ;;  %s982_s5 = smov 64   ;;  %s169_s30 = int_to_ptr.vmem [resolvable:$true] %s168_s30 }
   0xc   : > { %p730_p4 = pneg %p1052_p3  ;;  %s983_s6 = smov 4  }
   0xd   : > { %s672_s7 = sadd.s32 4294967294, %s978_s18   ;;  %s1066_s8 = sadd.s32 1, %s978_s18  }
   0xe   : > { %p731_p6 = pnand %p730_p4, %p42_p1  ;;  %s25_s9 = ssub.s32 %s978_s18, %s1066_s8 }
   0xf   : > { %s28_s10 = sadd.s32 1, %s974_s17  ;;  %p26_p7 = scmp.eq.s32.totalorder %s25_s9, 0 }
  0x10   : > { %733 = dma.hbm_to_vmem [thread:$0]  (!%p731_p6), %s153_s21, 256, %s155_s25, [#allocation7], %s982_s5, %s982_s5, %s983_s6  }
  0x11   : > { %736 = dma.hbm_to_vmem [thread:$0]  (!%p731_p6), %s167_s28, 256, %s169_s30, [#allocation7], %s982_s5, %s982_s5, %s983_s6  }
  0x12   : > { %p35_p8 = scmp.ne.s32.totalorder %s974_s17, %s970_s16  ;;  %p36_p9 = scmp.eq.s32.totalorder %s978_s18, 0 }
  0x13   : > { %p41_p10 = scmp.ne.s32.totalorder %s970_s16, %s966_s15  ;;  %p128_p13 = scmp.eq.s32.totalorder %s1047_s22, 1 }
  0x14   : > { %s1077_s11 = scalar_select %p26_p7, %s974_s17, %s28_s10  }
  0x15   : > { %p1079_p11 = por %p36_p9, %p35_p8  ;;  %p1085_p12 = por %p42_p1, %p41_p10 }
  0x16   : > { %p134_p0 = scmp.eq.s32.totalorder %s672_s7, 1  ;;  %p747_p2 = scmp.lt.s32.totalorder %s978_s18, 2 }
  0x17   : > { %s185_s14 = sand.u32 1, %s974_s17   ;;  %p1092_p4 = por %p128_p13, %p35_p8 }
  0x18   : > { %p1096_p6 = por %p134_p0, %p41_p10  ;;  %s677_s21 = sshll.u32 %s185_s14, 2 }
  0x19   : > { %s678_s24 = sshll.u32 %s978_s18, 2  ;;  %s189_s28 = scalar_lea.vmem [#allocation3], %s677_s21 }
  0x1a   : > { %s193_s27 = scalar_lea.hbm %s1214_s0, %s678_s24  ;;  %s197_s29 = sshll.u32 %s189_s28, 4  ;;  %s198_s29 = int_to_ptr.vmem [resolvable:$true] %s197_s29 }
  0x1b   : > { %s195_s30 = sshll.u32 %s193_s27, 4  ;;  %p1106_p7 = pnand %p747_p2, %p1079_p11  ;;  %s196_s30 = int_to_ptr.hbm [resolvable:$true] %s195_s30 }
  0x1c   : > { %s186_s6 = scalar_lea.sflag [#allocation4], %s185_s14  ;;  %s878_s7 = sshra.s32 %s196_s30, 4  ;;  %s879_s7 = int_to_ptr.hbm [resolvable:$true] %s878_s7 }
  0x1d   : > { %s880_s9 = scalar_lea.hbm %s879_s7, 4  ;;  %p882_p9 = pneg %p1106_p7 }
  0x1e   : > { %p881_p8 = scmp.ne.s32.totalorder %s879_s7, %s880_s9  ;;  %s885_s24 = scalar_lea.hbm %s1214_s0, 8 }
  0x1f   : > { %p886_p11 = scmp.lt.s32.totalorder %s879_s7, %s1214_s0  ;;  %p887_p0 = scmp.lt.s32.totalorder %s885_s24, %s880_s9 }
  0x20   : > { %p883_p10 = pnand %p882_p9, %p881_p8 }
  0x21   : > { %p888_p2 = por %p887_p0, %p886_p11 }
  0x22   : > { %p884_p13 = pneg %p883_p10 }
  0x24   : > { %p889_p5 = pnand %p888_p2, %p884_p13 }
  0x26   : > { %892 = shalt.err (!%p889_p5)
}
  0x27   : > { %740 = dma.hbm_to_vmem [thread:$0]  (!%p1106_p7), %s196_s30, 64, %s198_s29, %s186_s6  }
  0x28   : > { %206 = sbr.rel (%p1052_p3) target bundleno = 989 (0x3dd), region = 36  ;;  %s1123_s14 = sand.u32 (!%p1052_p3), 1, %s970_s16  }
  0x29   : > { %s680_s26 = sshll.u32 (!%p1052_p3), %s1123_s14, 2  ;;  %s209_s27 = scalar_lea.sflag (!%p1052_p3), [#allocation4], %s1123_s14 }
  0x2a   : > { %s212_s28 = scalar_lea.vmem (!%p1052_p3), [#allocation3], %s680_s26 }
  0x2d   : > { %953 = dma.done.wait (%p1085_p12), %s209_s27, 64  }
  0x2e   : > { %955 = vsyncadd (%p1085_p12), %s209_s27, 4294967232 }
  0x2f   : > { %957 = dma.done.wait (%p42_p1), [#allocation7], 512  }
  0x30   : > { %959 = vsyncadd (%p42_p1), [#allocation7], 4294966784  ;;  %v715_v0 = vld [vmem:[#allocation6 + $0x8] sm:$0xff]  ;;  %v714_v1 = vld [vmem:[#allocation6] sm:$0xff]  ;;  %vm266_vm0 = vcmask 261120   ;;  %s984_s23 = smov 104  }
  0x31   : > { %276 = vmatpush.bf16.msra.mxu0 %v715_v0  ;;  %v249_v2 = vld [vmem:[%s212_s28] sm:$0xf]  ;;  %s985_s13 = smov 120   ;;  %s986_s29 = smov 96   ;;  %vm287_vm1 = vcmask 64512   ;;  %vm323_vm2 = vcmask 1043456  }
  0x32   : > { %s987_s30 = smov 80   ;;  %s988_s5 = smov 72   ;;  %vm402_vm3 = vcmask 130112   ;;  %vm464_vm4 = vcmask 195712   ;;  %vm526_vm5 = vcmask 261312  }
  0x33   : > { %s989_s6 = smov 88   ;;  %s990_s7 = smov 64  }
  0x34   : > { %s991_s9 = smov 112   ;;  %s992_s10 = smov 56  }
  0x35   : > { %277 = vmatpush.bf16.msra.mxu0 %v714_v1  ;;  %s993_s21 = smov 48   ;;  %s994_s24 = smov 40  }
  0x36   : > { %s995_s25 = smov 8   ;;  %s996_s12 = smov 16  }
  0x37   : > { %s997_s26 = smov 24   ;;  %s711_s27 = sshll.u32 %s1047_s22, 3 }
  0x38   : > { %692 = vmatmul.msk.bf16.vlgmr.msra.gmra.mxu0 %vm266_vm0, %v249_v2  ;;  %s683_s28 = sshll.u32 %s1123_s14, 3  ;;  %s568_s22 = scalar_lea.sflag [#allocation5], %s1123_s14 }
  0xb5   : > { %v279_v3 = vpop.f32.mrf.mxu0 }
  0xb6   : > { %v1136_v4 = vpack.c.bf16 %v279_v3, %v279_v3 }
  0xb8   : > { %466 = vrot.lane.b32.xlu2 %v1136_v4, %s984_s23  ;;  %342 = vrot.lane.b32.xlu1 %v1136_v4, %s985_s13 }
  0xb9   : > { %285 = vrot.lane.b32.xlu0 %v1136_v4, %s986_s29  ;;  %s578_s29 = scalar_lea.hbm %s1218_s4, %s711_s27 }
  0xbd   : > { %v281_v5 = vpop.f32.mrf.mxu0 }
  0xc0   : > { %406 = vrot.lane.b32.xlu2 %v1136_v4, %s987_s30  ;;  %468 = vrot.lane.b32.xlu1 %v1136_v4, %s988_s5 }
  0xc1   : > { %344 = vrot.lane.b32.xlu0 %v1136_v4, %s989_s6  ;;  %s247_s6 = scalar_lea.vmem [#allocation9], %s683_s28 }
  0xc8   : > { %318 = vrot.lane.b32.xlu2 %v1136_v4, %s990_s7  ;;  %s580_s7 = sshll.u32 %s247_s6, 4  ;;  %s581_s7 = int_to_ptr.vmem [resolvable:$true] %s580_s7 }
  0xc9   : > { %404 = vrot.lane.b32.xlu0 %v1136_v4, %s991_s9  ;;  %s582_s9 = sshll.u32 %s578_s29, 4  ;;  %s583_s9 = int_to_ptr.hbm [resolvable:$true] %s582_s9 }
  0xd0   : > { %376 = vrot.lane.b32.xlu2 %v1136_v4, %s992_s10  ;;  %s922_s10 = sshra.s32 %s583_s9, 4  ;;  %s923_s10 = int_to_ptr.hbm [resolvable:$true] %s922_s10 }
  0xd1   : > { %p929_p12 = scmp.lt.s32.totalorder %s923_s10, %s1218_s4 }
 0x112   : > { %v467_v6 = vpop.permute.xlu2 %466 }
 0x11a   : > { %v407_v7 = vpop.permute.xlu2 %406 }
 0x11b   : > { %v412_v8 = vsel %vm287_vm1, %v407_v7, 0 }
 0x11c   : > { %421 = vmatpush.bf16.xpose.msrb.mxu0 %v412_v8 }
 0x122   : > { %v319_v9 = vpop.permute.xlu2 %318 }
 0x123   : > { %v325_v10 = vsel %vm323_vm2, %v319_v9, 0 }
 0x124   : > { %334 = vmatpush.bf16.msra.mxu2 %v325_v10 }
 0x12a   : > { %v377_v11 = vpop.permute.xlu2 %376  ;;  %v343_v12 = vpop.permute.xlu1 %342 }
 0x12b   : > { %v286_v13 = vpop.permute.xlu0 %285  ;;  %v382_v14 = vsel %vm323_vm2, %v377_v11, 0 }
 0x12c   : > { %v292_v15 = vsel %vm287_vm1, %v286_v13, 0  ;;  %391 = vmatpush.bf16.msrb.mxu2 %v382_v14 }
 0x12d   : > { %301 = vmatpush.bf16.xpose.msra.mxu1 %v292_v15 }
 0x132   : > { %v469_v16 = vpop.permute.xlu1 %468 }
 0x133   : > { %v345_v17 = vpop.permute.xlu0 %344  ;;  %v474_v18 = vsel %vm287_vm1, %v469_v16, 0 }
 0x134   : > { %693 = vmatmul.msk.bf16.vlgmr.msra.gmra.mxu1 %vm287_vm1, %v1136_v4  ;;  %v350_v19 = vsel %vm287_vm1, %v345_v17, 0  ;;  %v717_v17 = vld [vmem:[#allocation8 + $0x8] sm:$0xff] }
 0x135   : > { %359 = vmatpush.bf16.xpose.msra.mxu3 %v350_v19  ;;  %559 = vmatpush.bf16.msra.mxu0 %v717_v17 }
 0x13b   : > { %v405_v20 = vpop.permute.xlu0 %404 }
 0x13c   : > { %695 = vmatmul.msk.bf16.vlgmr.msra.gmra.mxu3 %vm287_vm1, %v343_v12  ;;  %697 = vmatmul.msk.bf16.vlgmr.msrb.gmra.mxu0 %vm287_vm1, %v405_v20 }
 0x13d   : > { %483 = vmatpush.bf16.xpose.msrb.mxu3 %v474_v18  ;;  %v716_v18 = vld [vmem:[#allocation8] sm:$0xff] }
 0x13e   : > { %560 = vmatpush.bf16.msra.mxu0 %v716_v18 }
 0x14c   : > { %699 = vmatmul.msk.bf16.vlgmr.msrb.gmra.mxu3 %vm287_vm1, %v467_v6 }
 0x1b1   : > { %v303_v21 = vpop.f32.mrf.mxu1 }
 0x1b2   : > { %v307_v22 = vsel %vm287_vm1, %v303_v21, -inf }
 0x1b3   : > { %308 = vmax.xlane.f32.xlu1 %v307_v22 }
 0x1b9   : > { %v305_v23 = vpop.f32.mrf.mxu1  ;;  %v423_v24 = vpop.f32.mrf.mxu0 }
 0x1ba   : > { %v427_v25 = vsel %vm287_vm1, %v423_v24, -inf }
 0x1bb   : > { %428 = vmax.xlane.f32.xlu1 %v427_v25 }
 0x1bf   : > { %v361_v26 = vpop.f32.mrf.mxu3 }
 0x1c0   : > { %v365_v27 = vsel %vm287_vm1, %v361_v26, -inf }
 0x1c1   : > { %366 = vmax.xlane.f32.xlu0 %v365_v27  ;;  %v425_v28 = vpop.f32.mrf.mxu0 }
 0x1c7   : > { %v363_v29 = vpop.f32.mrf.mxu3 }
 0x1cf   : > { %v485_v30 = vpop.f32.mrf.mxu3 }
 0x1d0   : > { %v489_v31 = vsel %vm287_vm1, %v485_v30, -inf }
 0x1d1   : > { %490 = vmax.xlane.f32.xlu2 %v489_v31 }
 0x1d4   : > { %438 = vrot.lane.b32.xlu1 %v1136_v4, %s993_s21  ;;  %s924_s21 = scalar_lea.hbm %s923_s10, 8 }
 0x1d5   : > { %500 = vrot.lane.b32.xlu0 %v1136_v4, %s994_s24  ;;  %p925_p1 = scmp.ne.s32.totalorder %s923_s10, %s924_s21 }
 0x1d7   : > { %v487_v32 = vpop.f32.mrf.mxu3  ;;  %p926_p3 = pnand %p925_p1, %p1092_p4 }
 0x1d9   : > { %p927_p5 = pneg %p926_p3 }
 0x226   : > { %v309_v33 = vpop.xlane.xlu1 %308 }
 0x227   : > { %v310_v34 = vsub.f32 %v303_v21, %v309_v33 }
 0x229   : > { %v311_v35 = vmul.f32 1.442695, %v310_v34 }
 0x22b   : > { %802 = vpow2.f32 %v311_v35 }
 0x22e   : > { %v429_v38 = vpop.xlane.xlu1 %428 }
 0x22f   : > { %v430_v41 = vsub.f32 %v423_v24, %v429_v38  ;;  %v801_v24 = vld [vmem:[%s1217_s3] ss:$0 sm:$0xff] }
 0x231   : > { %v803_v36 = vpop.eup %802  ;;  %v431_v43 = vmul.f32 1.442695, %v430_v41 }
 0x232   : > { %v317_v37 = vpack.c.bf16 %v803_v36, %v803_v36  ;;  %v313_v59 = vsel %vm287_vm1, %v803_v36, 0.0 }
 0x234   : > { %694 = vmatmul.msk.bf16.vlgmr.msra.gmra.mxu2 %vm287_vm1, %v317_v37  ;;  %v367_v39 = vpop.xlane.xlu0 %366 }
 0x235   : > { %v368_v40 = vsub.f32 %v361_v26, %v367_v39 }
 0x237   : > { %v369_v42 = vmul.f32 1.442695, %v368_v40 }
 0x239   : > { %804 = vpow2.f32 %v369_v42 }
 0x23a   : > { %806 = vpow2.f32 %v431_v43 }
 0x23f   : > { %v805_v44 = vpop.eup %804 }
 0x240   : > { %v371_v45 = vsel %vm287_vm1, %v805_v44, 0.0  ;;  %v375_v46 = vpack.c.bf16 %v805_v44, %v805_v44  ;;  %v807_v48 = vpop.eup %806 }
 0x241   : > { %372 = vadd.xlane.f32.xlu2 %v371_v45  ;;  %v433_v55 = vsel %vm287_vm1, %v807_v48, 0.0  ;;  %v437_v56 = vpack.c.bf16 %v807_v48, %v807_v48 }
 0x244   : > { %v491_v47 = vpop.xlane.xlu2 %490  ;;  %696 = vmatmul.msk.bf16.vlgmr.msrb.gmra.mxu2 %vm287_vm1, %v375_v46 }
 0x245   : > { %v492_v49 = vsub.f32 %v485_v30, %v491_v47 }
 0x246   : > { %v439_v50 = vpop.permute.xlu1 %438 }
 0x247   : > { %v493_v51 = vmul.f32 1.442695, %v492_v49  ;;  %v501_v52 = vpop.permute.xlu0 %500  ;;  %v444_v53 = vsel %vm323_vm2, %v439_v50, 0 }
 0x248   : > { %v506_v54 = vsel %vm323_vm2, %v501_v52, 0  ;;  %453 = vmatpush.bf16.msrb.mxu1 %v444_v53 }
 0x249   : > { %808 = vpow2.f32 %v493_v51  ;;  %515 = vmatpush.bf16.msra.mxu2 %v506_v54  ;;  %434 = vadd.xlane.f32.xlu2 %v433_v55 }
 0x24b   : > { %698 = vmatmul.msk.bf16.vlgmr.msrb.gmra.mxu1 %vm287_vm1, %v437_v56 }
 0x24f   : > { %v809_v57 = vpop.eup %808 }
 0x250   : > { %v495_v58 = vsel %vm287_vm1, %v809_v57, 0.0  ;;  %v499_v60 = vpack.c.bf16 %v809_v57, %v809_v57 }
 0x251   : > { %496 = vadd.xlane.f32.xlu0 %v495_v58  ;;  %314 = vadd.xlane.f32.xlu2 %v313_v59 }
 0x254   : > { %700 = vmatmul.msk.bf16.vlgmr.msra.gmra.mxu2 %vm287_vm1, %v499_v60 }
 0x2b4   : > { %v373_v61 = vpop.xlane.xlu2 %372 }
 0x2b5   : > { %810 = vrcp.f32 %v373_v61 }
 0x2b7   : > { %v336_v62 = vpop.f32.mrf.mxu2 }
 0x2bb   : > { %v811_v2 = vpop.eup %810 }
 0x2bc   : > { %v435_v63 = vpop.xlane.xlu2 %434 }
 0x2bd   : > { %812 = vrcp.f32 %v435_v63 }
 0x2bf   : > { %v338_v0 = vpop.f32.mrf.mxu2 }
 0x2c3   : > { %v813_v4 = vpop.eup %812 }
 0x2c4   : > { %v315_v1 = vpop.xlane.xlu2 %314  ;;  %v497_v10 = vpop.xlane.xlu0 %496 }
 0x2c5   : > { %814 = vrcp.f32 %v315_v1 }
 0x2c6   : > { %816 = vrcp.f32 %v497_v10 }
 0x2c7   : > { %v393_v3 = vpop.f32.mrf.mxu2 }
 0x2c8   : > { %v397_v5 = vmul.f32 %v811_v2, %v393_v3  ;;  %v455_v6 = vpop.f32.mrf.mxu1 }
 0x2c9   : > { %v459_v7 = vmul.f32 %v813_v4, %v455_v6 }
 0x2ca   : > { %399 = vrot.lane.b32.xlu1 %v397_v5, %s995_s25 }
 0x2cb   : > { %461 = vrot.lane.b32.xlu2 %v459_v7, %s996_s12  ;;  %v815_v8 = vpop.eup %814  ;;  %s928_s12 = scalar_lea.hbm %s1218_s4, 16 }
 0x2cc   : > { %v340_v9 = vmul.f32 %v815_v8, %v336_v62  ;;  %v817_v13 = vpop.eup %816  ;;  %p930_p7 = scmp.lt.s32.totalorder %s928_s12, %s924_s21 }
 0x2ce   : > { %341 = vst.msk [vmem:[#allocation2] sm:$0xff] %vm287_vm1, %v340_v9  ;;  %p931_p8 = por %p930_p7, %p929_p12 }
 0x2cf   : > { %v395_v11 = vpop.f32.mrf.mxu2 }
 0x2d0   : > { %v457_v12 = vpop.f32.mrf.mxu1  ;;  %p932_p9 = pnand %p931_p8, %p927_p5 }
 0x2d7   : > { %v517_v14 = vpop.f32.mrf.mxu2 }
 0x2d8   : > { %v521_v15 = vmul.f32 %v817_v13, %v517_v14 }
 0x2da   : > { %523 = vrot.lane.b32.xlu1 %v521_v15, %s997_s26 }
 0x2df   : > { %v519_v16 = vpop.f32.mrf.mxu2 }
 0x325   : > { %v462_v20 = vpop.permute.xlu2 %461 }
 0x33c   : > { %v400_v19 = vpop.permute.xlu1 %399 }
 0x33d   : > { %403 = vst.msk [vmem:[#allocation2] sm:$0xff] %vm402_vm3, %v400_v19 }
 0x33e   : > { %465 = vst.msk [vmem:[#allocation2] sm:$0xff] %vm464_vm4, %v462_v20 }
 0x34c   : > { %v524_v21 = vpop.permute.xlu1 %523 }
 0x34d   : > { %527 = vst.msk [vmem:[#allocation2] sm:$0xff] %vm526_vm5, %v524_v21 }
 0x354   : > { %v528_v22 = vld [vmem:[#allocation2] sm:$0xff] }
 0x355   : > { %v529_v23 = vpack.c.bf16 %v528_v22, %v528_v22 }
 0x357   : > { %709 = vmatmul.msk.bf16.vlgmr.msra.gmra.mxu0 %vm266_vm0, %v529_v23 }
 0x3d4   : > { %v562_v25 = vpop.f32.mrf.mxu0 }
 0x3d5   : > { %v563_v26 = vadd.f32 %v801_v24, %v562_v25 }
 0x3d7   : > { %566 = vst.msk [vmem:[%s247_s6] sm:$0xff] %vm266_vm0, %v563_v26 }
 0x3d8   : > { %935 = shalt.err (!%p932_p9)
}
 0x3d9   : > { %728 = dma.vmem_to_hbm [thread:$0]  (%p1092_p4), %s581_s7, 128, %s583_s9, %s568_s22  }
 0x3dc   : > { %v564_v27 = vpop.f32.mrf.mxu0 }
 0x3dd PF: > { %s594_s14 = sand.u32 1, %s966_s15   ;;  %p1225_p10 = scmp.ge.s32.totalorder %s978_s18, 2 }
 0x3de   : > { %s595_s28 = scalar_lea.sflag [#allocation5], %s594_s14 }
 0x3df   : > { %p742_p13 = pnand %p1225_p10, %p1096_p6 }
 0x3e1   : > { %p743_p11 = pneg %p742_p13 }
 0x3e3   : > { %961 = dma.done.wait (%p743_p11), %s595_s28, 128  }
 0x3e4   : > { %963 = vsyncadd (%p743_p11), %s595_s28, 4294967168  ;;  %p18_p0 = scmp.ge.s32.totalorder %s1066_s8, 4   ;;  %s1226_s15 = smov %s970_s16 }
 0x3e5   : > { %s1227_s16 = smov %s974_s17  ;;  %s1228_s17 = smov %s1077_s11 }
 0x3e6   : > { %s1229_s18 = smov %s1066_s8  ;;  %20 = sbr.rel (!%p18_p0) target bundleno = 6 (0x6), region = 89 }
 0x3eb   :  { %601 = vsyncpa [#allocation4], 1 }
 0x3ec   :  { %603 = vsyncpa [#allocation4 + $0x1], 1 }
 0x3ed   :  { %604 = vsyncpa [#allocation7], 1 }
 0x3ee   :  { %605 = vsyncpa [#allocation5], 1 }
 0x3ef   :  { %607 = vsyncpa [#allocation5 + $0x1], 1 }

</bundles_post_ra>
